<compile_context>
chip_gen: v6e
topology: v6e:2x2x1
jax: 0.10.0
libtpu: 0.0.40
codegen_flags: <defaults>
</compile_context>

<pallas_src>
import functools

import numpy as np
import jax
import jax.numpy as jnp
from jax.experimental import pallas as pl
from jax.experimental.pallas import tpu as pltpu

# ------------------------- synthetic config (small) -------------------------
B, S, H = 2, 16, 128         # batch, sequence, hidden_size (128 = lane width)
C = 8                        # config.num_ctc_type
F = 11                       # format feature width
DEPTH = 4                    # tree position depth
VOCAB, NUM_SZ, ORDER_SZ, ROWCOL_SZ, DEGREE = 64, 12, 32, 32, 8
AGGREGATOR = "avg"           # config.aggregator in {"sum", "avg"}
LANES = 128                  # pad class dim to a full lane width


# ------------------------------ Pallas kernel --------------------------------
def _fused_kernel(emb_ref, ind_row_ref, ind_col_ref, lbl_ref, sep_m_ref,
                  tok_m_ref, enc_wt_ref, enc_b_ref, wu_ref, bu_ref, wp_ref,
                  bp_ref, logits_ref, part_ref, *, aggregator):
    """Fused encoder stand-in + TctcHead for ONE batch element (grid=(B,)).

    - encoder stand-in: gelu(emb @ Wenc + b)                         (S, H)
    - token_sum / token_avg: bf16 (S, S) indicator-equality mask matmul
    - sep/tok uniform linears fused into one (S, 2H) matmul + tanh
    - shared predict linear on the (2S, H) stacked hidden, lane-padded logits
    - masked cross-entropy partial sums [num_sep, cnt_sep, num_tok, cnt_tok]
    """
    Ss = emb_ref.shape[1]
    Hh = emb_ref.shape[2]
    S2 = logits_ref.shape[1]          # 2 * Ss
    CP = logits_ref.shape[2]          # LANES

    # ---- backbone stand-in projection ----
    emb = emb_ref[0].astype(jnp.bfloat16)                                 # (S, H)
    x = jax.nn.gelu(
        jnp.dot(emb, enc_wt_ref[...], preferred_element_type=jnp.float32)
        + enc_b_ref[...], approximate=True)                               # (S, H) f32
    # TODO(synk): PyTorch nn.GELU defaults to the exact erf form; the tanh
    # approximation is used here (backbone is a stand-in anyway).

    # ---- token_sum / token_avg (per-batch (S, S) mask, built directly bf16) ----
    eq = ind_col_ref[0] == ind_row_ref[0]                                 # (S, S) bool
    mask_b = eq.astype(jnp.bfloat16)
    summed = jnp.dot(mask_b, x.astype(jnp.bfloat16),
                     preferred_element_type=jnp.float32)                  # (S, H)
    if aggregator == "avg":
        counts = jnp.sum(eq.astype(jnp.float32), axis=-1, keepdims=True)  # (S, 1) ints
        cell = summed / counts                                            # exact divide
    else:
        cell = summed
    cell_bf = cell.astype(jnp.bfloat16)

    # ---- fused sep/tok uniform linears: one (S, 2H) matmul + tanh ----
    h = jnp.tanh(jnp.dot(cell_bf, wu_ref[...],
                         preferred_element_type=jnp.float32) + bu_ref[...])  # (S, 2H)
    hc = jnp.concatenate([h[:, :Hh], h[:, Hh:]], axis=0).astype(jnp.bfloat16)  # (2S, H)

    # ---- shared predict linear, lane-padded classes (padding bias = -1e9) ----
    logits = jnp.dot(hc, wp_ref[...],
                     preferred_element_type=jnp.float32) + bp_ref[...]    # (2S, CP)
    logits_ref[0] = logits                                                # lane-dense store

    # ---- masked cross-entropy partial sums ----
    lbl = lbl_ref[0]                                                      # (S, 1)
    lbl2 = jnp.concatenate([lbl, lbl], axis=0)                            # (2S, 1)
    cls = jax.lax.broadcasted_iota(jnp.int32, (S2, CP), 1)
    onehot = (cls == lbl2).astype(jnp.float32)                            # (2S, CP)
    mx = jnp.max(logits, axis=-1, keepdims=True)
    lse = mx + jnp.log(jnp.sum(jnp.exp(logits - mx), axis=-1, keepdims=True))
    picked = jnp.sum(logits * onehot, axis=-1, keepdims=True)
    ce = lse - picked                                                     # (2S, 1)

    sep_m = sep_m_ref[0]                                                  # (S, 1)
    tok_m = tok_m_ref[0]                                                  # (S, 1)
    num_sep = jnp.sum(ce[:Ss] * sep_m, axis=0, keepdims=True)             # (1, 1)
    den_sep = jnp.sum(sep_m, axis=0, keepdims=True)
    num_tok = jnp.sum(ce[Ss:] * tok_m, axis=0, keepdims=True)
    den_tok = jnp.sum(tok_m, axis=0, keepdims=True)
    part_ref[0] = jnp.concatenate([num_sep, den_sep, num_tok, den_tok], axis=1)


# ----------------------------- kernel wrapper ---------------------------------
def tctc_fused(emb, indicator, labels, sep_mask, tok_mask, w, aggregator):
    """One pallas_call: grid=(B,), per-batch fused encoder + head."""
    Bb, Ss, Hh = emb.shape
    H2 = w["wu_cat"].shape[-1]
    CP = w["wp"].shape[-1]

    kernel = functools.partial(_fused_kernel, aggregator=aggregator)

    in_specs = [
        pl.BlockSpec((1, Ss, Hh), lambda b: (b, 0, 0)),     # emb
        pl.BlockSpec((1, 1, Ss), lambda b: (b, 0, 0)),      # indicator (row view)
        pl.BlockSpec((1, Ss, 1), lambda b: (b, 0, 0)),      # indicator (col view)
        pl.BlockSpec((1, Ss, 1), lambda b: (b, 0, 0)),      # labels
        pl.BlockSpec((1, Ss, 1), lambda b: (b, 0, 0)),      # sep mask
        pl.BlockSpec((1, Ss, 1), lambda b: (b, 0, 0)),      # tok mask
        # weights: constant index_maps -> stay VMEM-resident across grid steps
        pl.BlockSpec((Hh, Hh), lambda b: (0, 0)),           # enc W^T (bf16)
        pl.BlockSpec((1, Hh), lambda b: (0, 0)),            # enc bias
        pl.BlockSpec((Hh, H2), lambda b: (0, 0)),           # [sep|tok] W^T (bf16)
        pl.BlockSpec((1, H2), lambda b: (0, 0)),            # [sep|tok] bias
        pl.BlockSpec((Hh, CP), lambda b: (0, 0)),           # predict W^T (bf16, padded)
        pl.BlockSpec((1, CP), lambda b: (0, 0)),            # predict bias (padded -1e9)
    ]
    out_specs = [
        pl.BlockSpec((1, 2 * Ss, CP), lambda b: (b, 0, 0)),  # logits [sep rows | tok rows]
        pl.BlockSpec((1, 1, 4), lambda b: (b, 0, 0)),        # CE partial sums
    ]
    out_shape = [
        jax.ShapeDtypeStruct((Bb, 2 * Ss, CP), jnp.float32),
        jax.ShapeDtypeStruct((Bb, 1, 4), jnp.float32),
    ]

    cost = pl.CostEstimate(
        flops=Bb * (2 * Ss * Hh * Hh + 2 * Ss * Ss * Hh
                    + 2 * Ss * Hh * H2 + 2 * (2 * Ss) * Hh * CP),
        transcendentals=Bb * (Ss * Hh + Ss * H2 + 2 * Ss * CP + 2 * Ss),
        bytes_accessed=(emb.size * 4 + 5 * Bb * Ss * 4
                        + (Hh * Hh + Hh * H2 + Hh * CP) * 2
                        + (Hh + H2 + CP) * 4
                        + Bb * (2 * Ss * CP + 4) * 4))

    logits, parts = pl.pallas_call(
        kernel,
        grid_spec=pltpu.PrefetchScalarGridSpec(
            num_scalar_prefetch=0, grid=(Bb,),
            in_specs=in_specs, out_specs=out_specs),
        out_shape=out_shape,
        compiler_params=pltpu.CompilerParams(
            dimension_semantics=("parallel",),
            vmem_limit_bytes=32 * 1024 * 1024),
        cost_estimate=cost,
    )(emb.astype(jnp.float32),
      indicator.reshape(Bb, 1, Ss),
      indicator.reshape(Bb, Ss, 1),
      labels, sep_mask, tok_mask,
      w["enc_wt"], w["enc_b"], w["wu_cat"], w["bu_cat"], w["wp"], w["bp"])
    return logits, parts


# ------------------------------ full forward ----------------------------------
def _embed(p, token_id, num_mag, num_pre, num_top, num_low, token_order,
           pos_row, pos_col, pos_top, pos_left, format_vec):
    return (p["tok_emb"][token_id] + p["mag_emb"][num_mag] + p["pre_emb"][num_pre]
            + p["topd_emb"][num_top] + p["low_emb"][num_low]
            + p["order_emb"][token_order]
            + p["row_emb"][pos_row] + p["col_emb"][pos_col]
            + jnp.sum(p["tree_top_emb"][pos_top], axis=2)
            + jnp.sum(p["tree_left_emb"][pos_left], axis=2)
            + format_vec @ p["fmt_w"].T + p["fmt_b"])


def prepare_head_weights(p):
    """One-time weight preprocessing (hoisted out of the per-forward hot path)."""
    Cc = p["pred_w"].shape[0]
    return dict(
        enc_wt=p["enc_w"].T.astype(jnp.bfloat16),                               # (H, H)
        enc_b=p["enc_b"].reshape(1, -1).astype(jnp.float32),                    # (1, H)
        wu_cat=jnp.concatenate([p["sep_w"].T, p["tok_w"].T],
                               axis=1).astype(jnp.bfloat16),                    # (H, 2H)
        bu_cat=jnp.concatenate([p["sep_b"], p["tok_b"]]
                               ).reshape(1, -1).astype(jnp.float32),            # (1, 2H)
        wp=jnp.pad(p["pred_w"].T,
                   ((0, 0), (0, LANES - Cc))).astype(jnp.bfloat16),             # (H, 128)
        bp=jnp.concatenate([p["pred_b"].astype(jnp.float32),
                            jnp.full((LANES - Cc,), -1e9, jnp.float32)]
                           ).reshape(1, LANES))                                 # (1, 128)


def _forward_core(params, prepared, token_id, num_mag, num_pre, num_top, num_low,
                  token_order, pos_row, pos_col, pos_top, pos_left,
                  format_vec, indicator, tctc_label, *, aggregator):
    p = params
    emb = _embed(p, token_id, num_mag, num_pre, num_top, num_low, token_order,
                 pos_row, pos_col, pos_top, pos_left, format_vec)
    Bb, Ss, Hh = emb.shape
    Cc = p["pred_w"].shape[0]

    # ---- validity / even-odd rank masks (replaces any host-side gather) ----
    flat_label = tctc_label.reshape(-1).astype(jnp.int32)
    valid = flat_label > -1
    rank = jnp.cumsum(valid.astype(jnp.int32)) - 1
    sep_mask = (valid & (rank % 2 == 0)).astype(jnp.float32).reshape(Bb, Ss, 1)
    tok_mask = (valid & (rank % 2 == 1)).astype(jnp.float32).reshape(Bb, Ss, 1)

    logits, parts = tctc_fused(
        emb, indicator.astype(jnp.int32), flat_label.reshape(Bb, Ss, 1),
        sep_mask, tok_mask, prepared, aggregator)

    sep_pred_full = jnp.argmax(logits[:, :Ss, :Cc], axis=-1).reshape(-1)  # (B*S,)
    tok_pred_full = jnp.argmax(logits[:, Ss:, :Cc], axis=-1).reshape(-1)  # (B*S,)

    tot = jnp.sum(parts, axis=(0, 1))                                     # (4,)
    sep_loss = tot[0] / jnp.maximum(tot[1], 1.0)
    tok_loss = tot[2] / jnp.maximum(tot[3], 1.0)
    return sep_loss, tok_loss, sep_pred_full, tok_pred_full


_forward_core_jit = jax.jit(_forward_core, static_argnames=("aggregator",))


def tuta_for_ctc_forward(params, prepared, token_id, num_mag, num_pre, num_top,
                         num_low, token_order, pos_row, pos_col, pos_top,
                         pos_left, format_vec, indicator, tctc_label,
                         aggregator=AGGREGATOR):
    if prepared is None:
        prepared = prepare_head_weights(params)
    sep_loss, tok_loss, sep_pred_full, tok_pred_full = _forward_core_jit(
        params, prepared, token_id, num_mag, num_pre, num_top, num_low,
        token_order, pos_row, pos_col, pos_top, pos_left, format_vec,
        indicator, tctc_label, aggregator=aggregator)

    # Final data-dependent selection for the returned prediction/label vectors.
    # Uses only the (host-visible) label input; runs after the whole jitted
    # device program has been dispatched, so it does not block the pipeline.
    flat_label_np = np.asarray(tctc_label).reshape(-1)
    valid_idx = np.nonzero(flat_label_np > -1)[0]
    sep_rows, tok_rows = valid_idx[0::2], valid_idx[1::2]
    sep_predict = sep_pred_full[sep_rows]
    tok_predict = tok_pred_full[tok_rows]
    sep_labels = jnp.asarray(flat_label_np[sep_rows])
    tok_labels = jnp.asarray(flat_label_np[tok_rows])
    return ((sep_loss, sep_predict, sep_labels),
            (tok_loss, tok_predict, tok_labels))


# --------------------------- pure-JAX reference --------------------------------
def _reference_losses(p, token_id, num_mag, num_pre, num_top, num_low,
                      token_order, pos_row, pos_col, pos_top, pos_left,
                      format_vec, indicator, tctc_label, aggregator):
    emb = _embed(p, token_id, num_mag, num_pre, num_top, num_low, token_order,
                 pos_row, pos_col, pos_top, pos_left, format_vec).astype(jnp.float32)
    enc = jax.nn.gelu(emb @ p["enc_w"].T + p["enc_b"], approximate=True)
    xm = indicator[:, None, :]
    ym = indicator[:, :, None]
    mask = (ym == xm).astype(jnp.float32)
    if aggregator == "avg":
        mask = mask / jnp.sum(mask, axis=-1, keepdims=True)
    cell = jnp.einsum("bij,bjh->bih", mask, enc)
    flat_label = tctc_label.reshape(-1)
    flat_cell = cell.reshape(flat_label.shape[0], -1)
    sel = np.nonzero(np.asarray(flat_label) > -1)[0]
    sel_states = flat_cell[sel]
    sel_labels = flat_label[sel]

    def branch(x, lbl, w, b):
        h = jnp.tanh(x @ w.T + b)
        logits = h @ p["pred_w"].T + p["pred_b"]
        lse = jax.nn.logsumexp(logits, axis=-1)
        picked = jnp.take_along_axis(logits, lbl[:, None], axis=-1)[:, 0]
        return jnp.mean(lse - picked)

    sep_loss = branch(sel_states[0::2], sel_labels[0::2], p["sep_w"], p["sep_b"])
    tok_loss = branch(sel_states[1::2], sel_labels[1::2], p["tok_w"], p["tok_b"])
    return sep_loss, tok_loss


# ---------------------------------- main ----------------------------------------
def _init_params(key):
    names_shapes = [
        ("tok_emb", (VOCAB, H)), ("mag_emb", (NUM_SZ, H)), ("pre_emb", (NUM_SZ, H)),
        ("topd_emb", (NUM_SZ, H)), ("low_emb", (NUM_SZ, H)), ("order_emb", (ORDER_SZ, H)),
        ("row_emb", (ROWCOL_SZ, H)), ("col_emb", (ROWCOL_SZ, H)),
        ("tree_top_emb", (DEGREE, H)), ("tree_left_emb", (DEGREE, H)),
        ("fmt_w", (H, F)), ("fmt_b", (H,)),
        ("enc_w", (H, H)), ("enc_b", (H,)),
        ("sep_w", (H, H)), ("sep_b", (H,)),      # uniform_linear_sep
        ("tok_w", (H, H)), ("tok_b", (H,)),      # uniform_linear_tok
        ("pred_w", (C, H)), ("pred_b", (C,)),    # predict_linear
    ]
    keys = jax.random.split(key, len(names_shapes))
    return {name: (0.02 * jax.random.normal(k, shape, jnp.float32))
            for (name, shape), k in zip(names_shapes, keys)}


if __name__ == "__main__":
    root = jax.random.PRNGKey(0)
    pkey, ikey = jax.random.split(root)
    params = _init_params(pkey)
    prepared = prepare_head_weights(params)   # one-time weight prep (hoisted)

    ks = jax.random.split(ikey, 16)
    token_id    = jax.random.randint(ks[0], (B, S), 0, VOCAB)
    num_mag     = jax.random.randint(ks[1], (B, S), 0, NUM_SZ)
    num_pre     = jax.random.randint(ks[2], (B, S), 0, NUM_SZ)
    num_top     = jax.random.randint(ks[3], (B, S), 0, NUM_SZ)
    num_low     = jax.random.randint(ks[4], (B, S), 0, NUM_SZ)
    token_order = jax.random.randint(ks[5], (B, S), 0, ORDER_SZ)
    pos_row     = jax.random.randint(ks[6], (B, S), 0, ROWCOL_SZ)
    pos_col     = jax.random.randint(ks[7], (B, S), 0, ROWCOL_SZ)
    pos_top     = jax.random.randint(ks[8], (B, S, DEPTH), 0, DEGREE)
    pos_left    = jax.random.randint(ks[9], (B, S, DEPTH), 0, DEGREE)
    format_vec  = jax.random.uniform(ks[10], (B, S, F), jnp.float32)
    # cell indicator: tokens sharing an id belong to the same cell
    indicator   = jnp.tile(jnp.repeat(jnp.arange(S // 2, dtype=jnp.int32), 2)[None, :],
                           (B, 1))
    # all labels valid (> -1): the even/odd sep/tok split matches the reference
    tctc_label  = jax.random.randint(ks[11], (B, S), 0, C)

    out = tuta_for_ctc_forward(params, prepared, token_id, num_mag, num_pre,
                               num_top, num_low, token_order, pos_row, pos_col,
                               pos_top, pos_left, format_vec, indicator,
                               tctc_label)
    jax.block_until_ready(out)
    (sep_loss, sep_pred, sep_lbl), (tok_loss, tok_pred, tok_lbl) = out
    assert sep_pred.shape == sep_lbl.shape and tok_pred.shape == tok_lbl.shape
    assert jnp.isfinite(sep_loss) and jnp.isfinite(tok_loss)

    # correctness check against a pure-JAX f32 reference (bf16 MXU operands
    # introduce tiny differences)
    ref_sep, ref_tok = _reference_losses(
        params, token_id, num_mag, num_pre, num_top, num_low, token_order,
        pos_row, pos_col, pos_top, pos_left, format_vec, indicator, tctc_label,
        AGGREGATOR)
    np.testing.assert_allclose(np.asarray(sep_loss), np.asarray(ref_sep),
                               rtol=2e-2, atol=2e-2)
    np.testing.assert_allclose(np.asarray(tok_loss), np.asarray(ref_tok),
                               rtol=2e-2, atol=2e-2)
    print("KERNEL_OK")
</pallas_src>

<mosaic_0001>
module attributes {stable_mosaic.version = 11 : i64} {
  func.func @_fused_kernel(%arg0: i32, %arg1: memref<1x16x128xf32, #tpu.memory_space<vmem>>, %arg2: memref<1x1x16xi32, #tpu.memory_space<vmem>>, %arg3: memref<1x16x1xi32, #tpu.memory_space<vmem>>, %arg4: memref<1x16x1xi32, #tpu.memory_space<vmem>>, %arg5: memref<1x16x1xf32, #tpu.memory_space<vmem>>, %arg6: memref<1x16x1xf32, #tpu.memory_space<vmem>>, %arg7: memref<128x128xbf16, #tpu.memory_space<vmem>>, %arg8: memref<1x128xf32, #tpu.memory_space<vmem>>, %arg9: memref<128x256xbf16, #tpu.memory_space<vmem>>, %arg10: memref<1x256xf32, #tpu.memory_space<vmem>>, %arg11: memref<128x128xbf16, #tpu.memory_space<vmem>>, %arg12: memref<1x128xf32, #tpu.memory_space<vmem>>, %arg13: memref<1x32x128xf32, #tpu.memory_space<vmem>>, %arg14: memref<1x1x4xf32, #tpu.memory_space<vmem>>) attributes {dimension_semantics = [#tpu.dimension_semantics<parallel>], iteration_bounds = array<i64: 2>, scalar_prefetch = 0 : i64, scratch_operands = 0 : i64, tpu.core_type = #tpu.core_type<tc>, window_params = [{transform_indices = @transform_0, window_bounds = array<i64: 1, 16, 128>}, {transform_indices = @transform_1, window_bounds = array<i64: 1, 1, 16>}, {transform_indices = @transform_2, window_bounds = array<i64: 1, 16, 1>}, {transform_indices = @transform_3, window_bounds = array<i64: 1, 16, 1>}, {transform_indices = @transform_4, window_bounds = array<i64: 1, 16, 1>}, {transform_indices = @transform_5, window_bounds = array<i64: 1, 16, 1>}, {pipeline_mode = #tpu.pipeline_mode<synchronous>, transform_indices = @transform_6, window_bounds = array<i64: 128, 128>}, {pipeline_mode = #tpu.pipeline_mode<synchronous>, transform_indices = @transform_7, window_bounds = array<i64: 1, 128>}, {pipeline_mode = #tpu.pipeline_mode<synchronous>, transform_indices = @transform_8, window_bounds = array<i64: 128, 256>}, {pipeline_mode = #tpu.pipeline_mode<synchronous>, transform_indices = @transform_9, window_bounds = array<i64: 1, 256>}, {pipeline_mode = #tpu.pipeline_mode<synchronous>, transform_indices = @transform_10, window_bounds = array<i64: 128, 128>}, {pipeline_mode = #tpu.pipeline_mode<synchronous>, transform_indices = @transform_11, window_bounds = array<i64: 1, 128>}, {transform_indices = @transform_12, window_bounds = array<i64: 1, 32, 128>}, {transform_indices = @transform_13, window_bounds = array<i64: 1, 1, 4>}]} {
    %c0 = arith.constant 0 : index
    %c0_0 = arith.constant 0 : index
    %c0_1 = arith.constant 0 : index
    %0 = vector.load %arg1[%c0, %c0_0, %c0_1] : memref<1x16x128xf32, #tpu.memory_space<vmem>>, vector<1x16x128xf32>
    %1 = vector.shape_cast %0 : vector<1x16x128xf32> to vector<16x128xf32>
    %2 = arith.truncf %1 : vector<16x128xf32> to vector<16x128xbf16>
    %c0_2 = arith.constant 0 : index
    %c0_3 = arith.constant 0 : index
    %3 = vector.load %arg7[%c0_2, %c0_3] : memref<128x128xbf16, #tpu.memory_space<vmem>>, vector<128x128xbf16>
    %cst = arith.constant dense<0.000000e+00> : vector<16x128xf32>
    %4 = tpu.matmul %2, %3, %cst {dimension_numbers = #tpu.dot_dimension_numbers<[1], [0], [0], [1], [0, 0, 1, 1], [], []>} : vector<16x128xbf16>, vector<128x128xbf16>, vector<16x128xf32> -> vector<16x128xf32>
    %c0_4 = arith.constant 0 : index
    %c0_5 = arith.constant 0 : index
    %5 = vector.load %arg8[%c0_4, %c0_5] : memref<1x128xf32, #tpu.memory_space<vmem>>, vector<1x128xf32>
    %6 = vector.broadcast %5 : vector<1x128xf32> to vector<16x128xf32>
    %7 = arith.addf %4, %6 : vector<16x128xf32>
    %8 = arith.mulf %7, %7 : vector<16x128xf32>
    %9 = arith.mulf %7, %8 : vector<16x128xf32>
    %cst_6 = arith.constant 4.471500e-02 : f32
    %10 = vector.broadcast %cst_6 : f32 to vector<16x128xf32>
    %11 = arith.mulf %10, %9 : vector<16x128xf32>
    %12 = arith.addf %7, %11 : vector<16x128xf32>
    %cst_7 = arith.constant 0.797884583 : f32
    %13 = vector.broadcast %cst_7 : f32 to vector<16x128xf32>
    %14 = arith.mulf %13, %12 : vector<16x128xf32>
    %15 = math.tanh %14 : vector<16x128xf32>
    %cst_8 = arith.constant 1.000000e+00 : f32
    %16 = vector.broadcast %cst_8 : f32 to vector<16x128xf32>
    %17 = arith.addf %16, %15 : vector<16x128xf32>
    %cst_9 = arith.constant 5.000000e-01 : f32
    %18 = vector.broadcast %cst_9 : f32 to vector<16x128xf32>
    %19 = arith.mulf %18, %17 : vector<16x128xf32>
    %20 = arith.mulf %7, %19 : vector<16x128xf32>
    %c0_10 = arith.constant 0 : index
    %c0_11 = arith.constant 0 : index
    %c0_12 = arith.constant 0 : index
    %21 = vector.load %arg3[%c0_10, %c0_11, %c0_12] : memref<1x16x1xi32, #tpu.memory_space<vmem>>, vector<1x16x1xi32>
    %22 = vector.shape_cast %21 : vector<1x16x1xi32> to vector<16x1xi32>
    %c0_13 = arith.constant 0 : index
    %c0_14 = arith.constant 0 : index
    %c0_15 = arith.constant 0 : index
    %23 = vector.load %arg2[%c0_13, %c0_14, %c0_15] : memref<1x1x16xi32, #tpu.memory_space<vmem>>, vector<1x1x16xi32>
    %24 = vector.shape_cast %23 : vector<1x1x16xi32> to vector<1x16xi32>
    %25 = vector.broadcast %22 : vector<16x1xi32> to vector<16x16xi32>
    %26 = vector.broadcast %24 : vector<1x16xi32> to vector<16x16xi32>
    %27 = arith.cmpi eq, %25, %26 : vector<16x16xi32>
    %28 = arith.extui %27 : vector<16x16xi1> to vector<16x16xi32>
    %29 = arith.sitofp %28 : vector<16x16xi32> to vector<16x16xf32>
    %30 = arith.truncf %29 : vector<16x16xf32> to vector<16x16xbf16>
    %31 = arith.truncf %20 : vector<16x128xf32> to vector<16x128xbf16>
    %cst_16 = arith.constant dense<0.000000e+00> : vector<16x128xf32>
    %32 = tpu.matmul %30, %31, %cst_16 {dimension_numbers = #tpu.dot_dimension_numbers<[1], [0], [0], [1], [0, 0, 1, 1], [], []>} : vector<16x16xbf16>, vector<16x128xbf16>, vector<16x128xf32> -> vector<16x128xf32>
    %33 = arith.extui %27 : vector<16x16xi1> to vector<16x16xi32>
    %34 = arith.sitofp %33 : vector<16x16xi32> to vector<16x16xf32>
    %cst_17 = arith.constant dense<0.000000e+00> : vector<16xf32>
    %35 = vector.multi_reduction <add>, %34, %cst_17 [1] : vector<16x16xf32> to vector<16xf32>
    %36 = vector.shape_cast %35 : vector<16xf32> to vector<16x1xf32>
    %37 = vector.broadcast %36 : vector<16x1xf32> to vector<16x128xf32>
    %38 = arith.divf %32, %37 : vector<16x128xf32>
    %39 = arith.truncf %38 : vector<16x128xf32> to vector<16x128xbf16>
    %c0_18 = arith.constant 0 : index
    %c0_19 = arith.constant 0 : index
    %40 = vector.load %arg9[%c0_18, %c0_19] : memref<128x256xbf16, #tpu.memory_space<vmem>>, vector<128x256xbf16>
    %cst_20 = arith.constant dense<0.000000e+00> : vector<16x256xf32>
    %41 = tpu.matmul %39, %40, %cst_20 {dimension_numbers = #tpu.dot_dimension_numbers<[1], [0], [0], [1], [0, 0, 1, 1], [], []>} : vector<16x128xbf16>, vector<128x256xbf16>, vector<16x256xf32> -> vector<16x256xf32>
    %c0_21 = arith.constant 0 : index
    %c0_22 = arith.constant 0 : index
    %42 = vector.load %arg10[%c0_21, %c0_22] : memref<1x256xf32, #tpu.memory_space<vmem>>, vector<1x256xf32>
    %43 = vector.broadcast %42 : vector<1x256xf32> to vector<16x256xf32>
    %44 = arith.addf %41, %43 : vector<16x256xf32>
    %45 = math.tanh %44 : vector<16x256xf32>
    %46 = vector.extract_strided_slice %45 {offsets = [0, 0], sizes = [16, 128], strides = [1, 1]} : vector<16x256xf32> to vector<16x128xf32>
    %47 = vector.extract_strided_slice %45 {offsets = [0, 128], sizes = [16, 128], strides = [1, 1]} : vector<16x256xf32> to vector<16x128xf32>
    %48 = tpu.concatenate %46, %47 in 0 : vector<16x128xf32>, vector<16x128xf32> -> vector<32x128xf32>
    %49 = arith.truncf %48 : vector<32x128xf32> to vector<32x128xbf16>
    %c0_23 = arith.constant 0 : index
    %c0_24 = arith.constant 0 : index
    %50 = vector.load %arg11[%c0_23, %c0_24] : memref<128x128xbf16, #tpu.memory_space<vmem>>, vector<128x128xbf16>
    %cst_25 = arith.constant dense<0.000000e+00> : vector<32x128xf32>
    %51 = tpu.matmul %49, %50, %cst_25 {dimension_numbers = #tpu.dot_dimension_numbers<[1], [0], [0], [1], [0, 0, 1, 1], [], []>} : vector<32x128xbf16>, vector<128x128xbf16>, vector<32x128xf32> -> vector<32x128xf32>
    %c0_26 = arith.constant 0 : index
    %c0_27 = arith.constant 0 : index
    %52 = vector.load %arg12[%c0_26, %c0_27] : memref<1x128xf32, #tpu.memory_space<vmem>>, vector<1x128xf32>
    %53 = vector.broadcast %52 : vector<1x128xf32> to vector<32x128xf32>
    %54 = arith.addf %51, %53 : vector<32x128xf32>
    %c0_28 = arith.constant 0 : index
    %c0_29 = arith.constant 0 : index
    %c0_30 = arith.constant 0 : index
    %55 = vector.load %arg13[%c0_28, %c0_29, %c0_30] : memref<1x32x128xf32, #tpu.memory_space<vmem>>, vector<1x32x128xf32>
    %56 = vector.shape_cast %55 : vector<1x32x128xf32> to vector<32x128xf32>
    %57 = vector.shape_cast %54 : vector<32x128xf32> to vector<1x32x128xf32>
    tpu.vector_store %arg13[%c0_28, %c0_29, %c0_30], %57 {strides = array<i32>} : memref<1x32x128xf32, #tpu.memory_space<vmem>>, vector<1x32x128xf32>,
    %c0_31 = arith.constant 0 : index
    %c0_32 = arith.constant 0 : index
    %c0_33 = arith.constant 0 : index
    %58 = vector.load %arg4[%c0_31, %c0_32, %c0_33] : memref<1x16x1xi32, #tpu.memory_space<vmem>>, vector<1x16x1xi32>
    %59 = vector.shape_cast %58 : vector<1x16x1xi32> to vector<16x1xi32>
    %60 = tpu.concatenate %59, %59 in 0 : vector<16x1xi32>, vector<16x1xi32> -> vector<32x1xi32>
    %61 = tpu.iota {dimensions = array<i32: 1>} : vector<32x128xi32>
    %62 = vector.broadcast %60 : vector<32x1xi32> to vector<32x128xi32>
    %63 = arith.cmpi eq, %61, %62 : vector<32x128xi32>
    %64 = arith.extui %63 : vector<32x128xi1> to vector<32x128xi32>
    %65 = arith.sitofp %64 : vector<32x128xi32> to vector<32x128xf32>
    %cst_34 = arith.constant dense<0xFF800000> : vector<32xf32>
    %66 = vector.multi_reduction <maximumf>, %54, %cst_34 [1] : vector<32x128xf32> to vector<32xf32>
    %67 = vector.shape_cast %66 : vector<32xf32> to vector<32x1xf32>
    %68 = vector.broadcast %67 : vector<32x1xf32> to vector<32x128xf32>
    %69 = arith.subf %54, %68 : vector<32x128xf32>
    %70 = math.exp %69 : vector<32x128xf32>
    %cst_35 = arith.constant dense<0.000000e+00> : vector<32xf32>
    %71 = vector.multi_reduction <add>, %70, %cst_35 [1] : vector<32x128xf32> to vector<32xf32>
    %72 = vector.shape_cast %71 : vector<32xf32> to vector<32x1xf32>
    %73 = math.log %72 : vector<32x1xf32>
    %74 = arith.addf %67, %73 : vector<32x1xf32>
    %75 = arith.mulf %54, %65 : vector<32x128xf32>
    %cst_36 = arith.constant dense<0.000000e+00> : vector<32xf32>
    %76 = vector.multi_reduction <add>, %75, %cst_36 [1] : vector<32x128xf32> to vector<32xf32>
    %77 = vector.shape_cast %76 : vector<32xf32> to vector<32x1xf32>
    %78 = arith.subf %74, %77 : vector<32x1xf32>
    %c0_37 = arith.constant 0 : index
    %c0_38 = arith.constant 0 : index
    %c0_39 = arith.constant 0 : index
    %79 = vector.load %arg5[%c0_37, %c0_38, %c0_39] : memref<1x16x1xf32, #tpu.memory_space<vmem>>, vector<1x16x1xf32>
    %80 = vector.shape_cast %79 : vector<1x16x1xf32> to vector<16x1xf32>
    %c0_40 = arith.constant 0 : index
    %c0_41 = arith.constant 0 : index
    %c0_42 = arith.constant 0 : index
    %81 = vector.load %arg6[%c0_40, %c0_41, %c0_42] : memref<1x16x1xf32, #tpu.memory_space<vmem>>, vector<1x16x1xf32>
    %82 = vector.shape_cast %81 : vector<1x16x1xf32> to vector<16x1xf32>
    %83 = vector.extract_strided_slice %78 {offsets = [0, 0], sizes = [16, 1], strides = [1, 1]} : vector<32x1xf32> to vector<16x1xf32>
    %84 = arith.mulf %83, %80 : vector<16x1xf32>
    %cst_43 = arith.constant dense<0.000000e+00> : vector<1xf32>
    %85 = vector.multi_reduction <add>, %84, %cst_43 [0] : vector<16x1xf32> to vector<1xf32>
    %86 = vector.shape_cast %85 : vector<1xf32> to vector<1x1xf32>
    %cst_44 = arith.constant dense<0.000000e+00> : vector<1xf32>
    %87 = vector.multi_reduction <add>, %80, %cst_44 [0] : vector<16x1xf32> to vector<1xf32>
    %88 = vector.shape_cast %87 : vector<1xf32> to vector<1x1xf32>
    %89 = vector.extract_strided_slice %78 {offsets = [16, 0], sizes = [16, 1], strides = [1, 1]} : vector<32x1xf32> to vector<16x1xf32>
    %90 = arith.mulf %89, %82 : vector<16x1xf32>
    %cst_45 = arith.constant dense<0.000000e+00> : vector<1xf32>
    %91 = vector.multi_reduction <add>, %90, %cst_45 [0] : vector<16x1xf32> to vector<1xf32>
    %92 = vector.shape_cast %91 : vector<1xf32> to vector<1x1xf32>
    %cst_46 = arith.constant dense<0.000000e+00> : vector<1xf32>
    %93 = vector.multi_reduction <add>, %82, %cst_46 [0] : vector<16x1xf32> to vector<1xf32>
    %94 = vector.shape_cast %93 : vector<1xf32> to vector<1x1xf32>
    %95 = tpu.concatenate %86, %88, %92, %94 in 1 : vector<1x1xf32>, vector<1x1xf32>, vector<1x1xf32>, vector<1x1xf32> -> vector<1x4xf32>
    %c0_47 = arith.constant 0 : index
    %c0_48 = arith.constant 0 : index
    %c0_49 = arith.constant 0 : index
    %96 = vector.load %arg14[%c0_47, %c0_48, %c0_49] : memref<1x1x4xf32, #tpu.memory_space<vmem>>, vector<1x1x4xf32>
    %97 = vector.shape_cast %96 : vector<1x1x4xf32> to vector<1x4xf32>
    %98 = vector.shape_cast %95 : vector<1x4xf32> to vector<1x1x4xf32>
    tpu.vector_store %arg14[%c0_47, %c0_48, %c0_49], %98 {strides = array<i32>} : memref<1x1x4xf32, #tpu.memory_space<vmem>>, vector<1x1x4xf32>,
    return
  }
  func.func @transform_0(%arg0: i32) -> (i32, i32, i32) {
    %c0_i32 = arith.constant 0 : i32
    %c0_i32_0 = arith.constant 0 : i32
    %c0_i32_1 = arith.constant 0 : i32
    return %arg0, %c0_i32, %c0_i32_0 : i32, i32, i32
  }
  func.func @transform_1(%arg0: i32) -> (i32, i32, i32) {
    %c0_i32 = arith.constant 0 : i32
    %c0_i32_0 = arith.constant 0 : i32
    %c0_i32_1 = arith.constant 0 : i32
    return %arg0, %c0_i32, %c0_i32_0 : i32, i32, i32
  }
  func.func @transform_2(%arg0: i32) -> (i32, i32, i32) {
    %c0_i32 = arith.constant 0 : i32
    %c0_i32_0 = arith.constant 0 : i32
    %c0_i32_1 = arith.constant 0 : i32
    return %arg0, %c0_i32, %c0_i32_0 : i32, i32, i32
  }
  func.func @transform_3(%arg0: i32) -> (i32, i32, i32) {
    %c0_i32 = arith.constant 0 : i32
    %c0_i32_0 = arith.constant 0 : i32
    %c0_i32_1 = arith.constant 0 : i32
    return %arg0, %c0_i32, %c0_i32_0 : i32, i32, i32
  }
  func.func @transform_4(%arg0: i32) -> (i32, i32, i32) {
    %c0_i32 = arith.constant 0 : i32
    %c0_i32_0 = arith.constant 0 : i32
    %c0_i32_1 = arith.constant 0 : i32
    return %arg0, %c0_i32, %c0_i32_0 : i32, i32, i32
  }
  func.func @transform_5(%arg0: i32) -> (i32, i32, i32) {
    %c0_i32 = arith.constant 0 : i32
    %c0_i32_0 = arith.constant 0 : i32
    %c0_i32_1 = arith.constant 0 : i32
    return %arg0, %c0_i32, %c0_i32_0 : i32, i32, i32
  }
  func.func @transform_6(%arg0: i32) -> (i32, i32) {
    %c0_i32 = arith.constant 0 : i32
    %c0_i32_0 = arith.constant 0 : i32
    %c0_i32_1 = arith.constant 0 : i32
    return %c0_i32, %c0_i32_0 : i32, i32
  }
  func.func @transform_7(%arg0: i32) -> (i32, i32) {
    %c0_i32 = arith.constant 0 : i32
    %c0_i32_0 = arith.constant 0 : i32
    %c0_i32_1 = arith.constant 0 : i32
    return %c0_i32, %c0_i32_0 : i32, i32
  }
  func.func @transform_8(%arg0: i32) -> (i32, i32) {
    %c0_i32 = arith.constant 0 : i32
    %c0_i32_0 = arith.constant 0 : i32
    %c0_i32_1 = arith.constant 0 : i32
    return %c0_i32, %c0_i32_0 : i32, i32
  }
  func.func @transform_9(%arg0: i32) -> (i32, i32) {
    %c0_i32 = arith.constant 0 : i32
    %c0_i32_0 = arith.constant 0 : i32
    %c0_i32_1 = arith.constant 0 : i32
    return %c0_i32, %c0_i32_0 : i32, i32
  }
  func.func @transform_10(%arg0: i32) -> (i32, i32) {
    %c0_i32 = arith.constant 0 : i32
    %c0_i32_0 = arith.constant 0 : i32
    %c0_i32_1 = arith.constant 0 : i32
    return %c0_i32, %c0_i32_0 : i32, i32
  }
  func.func @transform_11(%arg0: i32) -> (i32, i32) {
    %c0_i32 = arith.constant 0 : i32
    %c0_i32_0 = arith.constant 0 : i32
    %c0_i32_1 = arith.constant 0 : i32
    return %c0_i32, %c0_i32_0 : i32, i32
  }
  func.func @transform_12(%arg0: i32) -> (i32, i32, i32) {
    %c0_i32 = arith.constant 0 : i32
    %c0_i32_0 = arith.constant 0 : i32
    %c0_i32_1 = arith.constant 0 : i32
    return %arg0, %c0_i32, %c0_i32_0 : i32, i32, i32
  }
  func.func @transform_13(%arg0: i32) -> (i32, i32, i32) {
    %c0_i32 = arith.constant 0 : i32
    %c0_i32_0 = arith.constant 0 : i32
    %c0_i32_1 = arith.constant 0 : i32
    return %arg0, %c0_i32, %c0_i32_0 : i32, i32, i32
  }
}

</mosaic_0001>

<bundles_post_ra>
// kernel: _forward_core.1
= control target key start
LH: loop header
LB: loop body
LE: loop exit
PB: predicated region body
PF: predicated region fallthrough
CT: control target
= control target key end

     0   :  { %s1613_s25 = smov 0   ;;  %s1820_s0 = inlined_call_operand.vmem [shape: f32[2,16,128], index: 0, kind: input, shape index: {}]   ;;  %s1821_s1 = inlined_call_operand.vmem [shape: s32[2,1,16], index: 1, kind: input, shape index: {}]   ;;  %s1822_s2 = inlined_call_operand.vmem [shape: s32[2,16,1], index: 2, kind: input, shape index: {}]   ;;  %s1823_s3 = inlined_call_operand.vmem [shape: s32[2,16,1], index: 3, kind: input, shape index: {}]   ;;  %s1824_s4 = inlined_call_operand.vmem [shape: f32[2,16,1], index: 4, kind: input, shape index: {}]   ;;  %s1825_s5 = inlined_call_operand.vmem [shape: f32[2,16,1], index: 5, kind: input, shape index: {}]   ;;  %s1826_s6 = inlined_call_operand.vmem [shape: bf16[128,128], index: 6, kind: input, shape index: {}]   ;;  %s1827_s7 = inlined_call_operand.vmem [shape: f32[1,128], index: 7, kind: input, shape index: {}]   ;;  %s1828_s8 = inlined_call_operand.vmem [shape: bf16[128,256], index: 8, kind: input, shape index: {}]   ;;  %s1829_s9 = inlined_call_operand.vmem [shape: f32[1,256], index: 9, kind: input, shape index: {}]   ;;  %s1830_s10 = inlined_call_operand.vmem [shape: bf16[128,128], index: 10, kind: input, shape index: {}]   ;;  %s1831_s11 = inlined_call_operand.vmem [shape: f32[1,128], index: 11, kind: input, shape index: {}]   ;;  %s1832_s12 = inlined_call_operand.vmem [shape: f32[2,32,128], index: 12, kind: output, shape index: {0}]   ;;  %s1833_s13 = inlined_call_operand.vmem [shape: f32[2,1,4], index: 13, kind: output, shape index: {1}]  }
   0x1 LB: > { %s1309_s26 = sadd.s32 4294967295, %s1535_s25   ;;  %p1313_p0 = scmp.ge.s32.totalorder %s1535_s25, 1  ;;  %s1535_s25 = sphi %s1613_s25, %s24_s25  }
   0x2   : > { %p438_p1 = scmp.lt.s32.totalorder %s1535_s25, 3 }
   0x4   : > { %p439_p2 = pnand %p1313_p0, %p438_p1 }
   0x5   : > { %p508_p3 = scmp.lt.s32.totalorder (!%p439_p2), %s1309_s26, 1  ;;  %s1542_s20 = smov (!%p439_p2), 3  }
   0x6   : > { %442 = sbr.rel (%p439_p2) target bundleno = 1347 (0x543), region = 68 }
   0xb   : > { %v1457_v0 = vld [vmem:[%s1826_s6 + $0x38] sm:$0xff]   ;;  %v1537_v1 = vmov 0.0   ;;  %v1458_v2 = vld [vmem:[%s1826_s6 + $0x30] sm:$0xff]   ;;  %vm1538_vm0 = vmmov 0   ;;  %s1835_s26 = smov (!%p508_p3, %s1309_s26), 1  ;;  %v1539_v3 = vmov 0  }
   0xc   : > { %1395 = vmatprep.subr.bf16.mxu0 %v1537_v1  ;;  %1415 = vmatprep.subr.bf16.mxu1 %v1537_v1  ;;  %v1459_v4 = vld [vmem:[%s1826_s6 + $0x28] sm:$0xff]   ;;  %s1640_s16 = sshll.u32 %s1835_s26, 4  ;;  %v1460_v6 = vld [vmem:[%s1826_s6 + $0x20] sm:$0xff]   ;;  %v1461_v8 = vld [vmem:[%s1826_s6 + $0x18] sm:$0xff]   ;;  %s515_s21 = scalar_lea.vmem %s1821_s1, %s1835_s26  ;;  %vm699_vm1 = vcmask 130048   ;;  %vm1114_vm6 = vcmask 7168  }
   0xd   : > { %1396 = vmatpush3.bf16.msra.mxu0 %v1457_v0  ;;  %1411 = vmatprep.mubr.msk.bf16.mxu0 %vm1538_vm0, %v1537_v1  ;;  %s520_s19 = scalar_lea.vmem %s1822_s2, %s1640_s16  ;;  %v1462_v9 = vld [vmem:[%s1826_s6 + $0x10] sm:$0xff]   ;;  %v1463_v10 = vld [vmem:[%s1826_s6 + $0x8] sm:$0xff]   ;;  %s512_s15 = scalar_lea.vmem %s1820_s0, %s1640_s16  ;;  %v1464_v11 = vld [vmem:[%s1826_s6] sm:$0xff]   ;;  %vm1166_vm7 = vcmask 15360   ;;  %vm1168_vm8 = vcmask 23552   ;;  %vm1170_vm9 = vcmask 24576  }
   0xe   : > { %1397 = vmatprep.subr.bf16.mxu0 %v1537_v1  ;;  %1417 = vmatprep.mubr.msk.bf16.mxu1 %vm1538_vm0, %v1537_v1  ;;  %v678_v5 = vld [vmem:[%s520_s19] sm:$0xff]  ;;  %v679_v7 = vld [vmem:[%s520_s19 + $0x8] sm:$0xff]  ;;  %v1467_v48 = vld [vmem:[%s1828_s8 + $0x74] ss:$8 sps:$4 sm:$0xff]   ;;  %s1373_s18 = sshll.u32 %s1835_s26, 5  ;;  %s525_s28 = scalar_lea.vmem %s1823_s3, %s1640_s16 }
   0xf   : > { %1455 = vset.pattern.permute.xlu0 %v1539_v3  ;;  %1456 = vset.pattern.permute.xlu1 %v1539_v3  ;;  %v545_v12 = vld [vmem:[%s512_s15] sm:$0xff]  ;;  %v546_v13 = vld [vmem:[%s512_s15 + $0x8] sm:$0xff]  ;;  %v1465_v50 = vld [vmem:[%s1828_s8 + $0x70] ss:$8 sps:$4 sm:$0xff]   ;;  %s540_s23 = scalar_lea.vmem %s1832_s12, %s1373_s18  ;;  %s530_s14 = scalar_lea.vmem %s1824_s4, %s1640_s16 }
  0x10   : > { %682 = vperm.xlu0 %1455, %v678_v5   ;;  %v547_v14 = vpack.c.bf16 %v546_v13, %v545_v12  ;;  %v1335_v15 = vld [vmem:[%s515_s21] ss:$0 sm:$0xff]  ;;  %v1470_v51 = vld [vmem:[%s1828_s8 + $0x64] ss:$8 sps:$4 sm:$0xff]   ;;  %v1473_v53 = vld [vmem:[%s1828_s8 + $0x54] ss:$8 sps:$4 sm:$0xff]   ;;  %s535_s19 = scalar_lea.vmem %s1825_s5, %s1640_s16 }
  0x11   : > { %1398 = vmatpush3.bf16.msra.mxu0 %v1458_v2  ;;  %v1326_v23 = vld [vmem:[%s1827_s7] ss:$0 sm:$0xff]  ;;  %v1471_v54 = vld [vmem:[%s1828_s8 + $0x50] ss:$8 sps:$4 sm:$0xff]   ;;  %v1476_v55 = vld [vmem:[%s1828_s8 + $0x44] ss:$8 sps:$4 sm:$0xff]  }
  0x12   : > { %1399 = vmatprep.subr.bf16.mxu0 %v1537_v1  ;;  %v1468_v52 = vld [vmem:[%s1828_s8 + $0x60] ss:$8 sps:$4 sm:$0xff]   ;;  %v1479_v57 = vld [vmem:[%s1828_s8 + $0x34] ss:$8 sps:$4 sm:$0xff]   ;;  %v1477_v58 = vld [vmem:[%s1828_s8 + $0x30] ss:$8 sps:$4 sm:$0xff]  }
  0x13   : > { %v1474_v56 = vld [vmem:[%s1828_s8 + $0x40] ss:$8 sps:$4 sm:$0xff]   ;;  %v1482_v59 = vld [vmem:[%s1828_s8 + $0x24] ss:$8 sps:$4 sm:$0xff]   ;;  %v1485_v61 = vld [vmem:[%s1828_s8 + $0x14] ss:$8 sps:$4 sm:$0xff]  }
  0x14   : > { %685 = vperm.xlu0 %1455, %v679_v7   ;;  %v1480_v60 = vld [vmem:[%s1828_s8 + $0x20] ss:$8 sps:$4 sm:$0xff]   ;;  %v1483_v62 = vld [vmem:[%s1828_s8 + $0x10] ss:$8 sps:$4 sm:$0xff]   ;;  %v1488_v63 = vld [vmem:[%s1828_s8 + $0x4] ss:$8 sps:$4 sm:$0xff]  }
  0x15   : > { %1400 = vmatpush3.bf16.msra.mxu0 %v1459_v4  ;;  %v1486_v0 = vld [vmem:[%s1828_s8] ss:$8 sps:$4 sm:$0xff]   ;;  %v1489_v2 = vld [vmem:[%s1830_s10 + $0x38] sm:$0xff]   ;;  %s1540_s15 = smov 1   ;;  %s1541_s16 = smov 2  }
  0x16   : > { %1401 = vmatprep.subr.bf16.mxu0 %v1537_v1 }
  0x19   : > { %1402 = vmatpush3.bf16.msra.mxu0 %v1460_v6 }
  0x1a   : > { %1403 = vmatprep.subr.bf16.mxu0 %v1537_v1 }
  0x1d   : > { %1404 = vmatpush3.bf16.msra.mxu0 %v1461_v8 }
  0x1e   : > { %1405 = vmatprep.subr.bf16.mxu0 %v1537_v1 }
  0x21   : > { %1406 = vmatpush3.bf16.msra.mxu0 %v1462_v9 }
  0x22   : > { %1407 = vmatprep.subr.bf16.mxu0 %v1537_v1 }
  0x25   : > { %1408 = vmatpush3.bf16.msra.mxu0 %v1463_v10 }
  0x26   : > { %1409 = vmatprep.subr.bf16.mxu0 %v1537_v1 }
  0x29   : > { %1410 = vmatpush3.bf16.msra.mxu0 %v1464_v11 }
  0x2a   : > { %1421 = vmatprep.subr.bf16.mxu0 %v1489_v2 }
  0x2c   : > { %1412 = vmatmul.mubr.bf16.vlgmr.msra.gmra.mxu0 %v547_v14 }
  0x2d   : > { %1422 = vmatpush3.bf16.msra.mxu0 %v1489_v2 }
  0x8b   : > { %v683_v16 = vpop.permute.xlu0 %682 }
  0x8c   : > { %vm691_vm2 = vcmp.eq.s32.totalorder %v683_v16, %v1335_v15  ;;  %v1492_v16 = vld [vmem:[%s1830_s10 + $0x20] sm:$0xff]  }
  0x8d   : > { %v1336_v17 = vsel %vm691_vm2, 1.0, %v1537_v1 }
  0x8e   : > { %v744_v18 = vsel %vm699_vm1, %v1336_v17, 0.0 }
  0x8f   : > { %745 = vadd.xlane.f32.xlu1 %v744_v18  ;;  %v686_v19 = vpop.permute.xlu0 %685  ;;  %v1494_v18 = vld [vmem:[%s1830_s10 + $0x10] sm:$0xff]  }
  0x90   : > { %vm692_vm3 = vcmp.eq.s32.totalorder %v686_v19, %v1335_v15  ;;  %v1491_v15 = vld [vmem:[%s1830_s10 + $0x28] sm:$0xff]  }
  0x91   : > { %v1337_v20 = vsel %vm692_vm3, 1.0, %v1537_v1  ;;  %v1495_v19 = vld [vmem:[%s1830_s10 + $0x8] sm:$0xff]  }
  0x92   : > { %v747_v21 = vsel %vm699_vm1, %v1337_v20, 0.0  ;;  %v697_v22 = vpack.c.bf16 %v1337_v20, %v1336_v17  ;;  %v1493_v17 = vld [vmem:[%s1830_s10 + $0x18] sm:$0xff]   ;;  %v1496_v20 = vld [vmem:[%s1830_s10] sm:$0xff]  }
  0x93   : > { %748 = vadd.xlane.f32.xlu1 %v747_v21  ;;  %v773_v21 = vlaneseq }
  0xec   : > { %v653_v24 = vpop.f32.mrf.mxu0 }
  0xed   : > { %v654_v25 = vadd.f32 %v1326_v23, %v653_v24  ;;  %v771_v24 = vld [vmem:[%s1829_s9] sm:$0x3] }
  0xee   : > { %v1413_v26 = vpop.f32.mrf.mxu0 }
  0xef   : > { %v660_v27 = vmul.f32 %v654_v25, %v654_v25 }
  0xf0   : > { %v656_v28 = vpop.f32.mrf.mxu0 }
  0xf1   : > { %v662_v29 = vmul.f32 %v660_v27, %v654_v25  ;;  %v657_v30 = vadd.f32 %v1326_v23, %v656_v28 }
  0xf2   : > { %v1414_v31 = vpop.f32.mrf.mxu0 }
  0xf3   : > { %v664_v32 = vmul.f32 0.044715, %v662_v29  ;;  %v661_v33 = vmul.f32 %v657_v30, %v657_v30 }
  0xf5   : > { %v666_v34 = vadd.f32 %v664_v32, %v654_v25  ;;  %v663_v35 = vmul.f32 %v661_v33, %v657_v30 }
  0xf7   : > { %v668_v36 = vmul.f32 0.7978846, %v666_v34  ;;  %v665_v37 = vmul.f32 0.044715, %v663_v35 }
  0xf9   : > { %v667_v38 = vadd.f32 %v665_v37, %v657_v30  ;;  %1497 = vtanh.f32 %v668_v36 }
  0xfb   : > { %v669_v39 = vmul.f32 0.7978846, %v667_v38 }
  0xfd   : > { %1499 = vtanh.f32 %v669_v39 }
 0x106   : > { %v1498_v40 = vpop.eup %1497 }
 0x107   : > { %v672_v41 = vadd.f32 1.0, %v1498_v40 }
 0x109   : > { %v674_v44 = vmul.f32 0.5, %v672_v41 }
 0x10a   : > { %v1500_v42 = vpop.eup %1499 }
 0x10b   : > { %v673_v43 = vadd.f32 1.0, %v1500_v42  ;;  %v676_v46 = vmul.f32 %v674_v44, %v654_v25  ;;  %v1355_v42 = vld [vmem:[%s1831_s11] ss:$0 sm:$0xff] }
 0x10d   : > { %v675_v45 = vmul.f32 0.5, %v673_v43 }
 0x10f   : > { %v677_v47 = vmul.f32 %v675_v45, %v657_v30 }
 0x111   : > { %v698_v49 = vpack.c.bf16 %v677_v47, %v676_v46 }
 0x113   : > { %1416 = vmatpush3.bf16.msra.mxu1 %v698_v49 }
 0x114   : > { %863 = vmatprep.subr.bf16.mxu1 %v1467_v48 }
 0x116   : > { %1418 = vmatmul.mubr.msk.bf16.vlgmr.msra.gmra.mxu1 %vm699_vm1, %v697_v22  ;;  %v774_v22 = vshrl.u32 %v773_v21, 7 }
 0x117   : > { %864 = vmatpush1.bf16.msra.mxu1 %v1465_v50  ;;  %895 = vmatprep.mubr.bf16.mxu1 %v1539_v3  ;;  %v1490_v3 = vld [vmem:[%s1830_s10 + $0x30] sm:$0xff]  }
 0x118   : > { %865 = vmatprep.subr.bf16.mxu1 %v1470_v51  ;;  %1423 = vmatprep.subr.bf16.mxu0 %v1490_v3  ;;  %v746_v4 = vpop.xlane.xlu1 %745  ;;  %v775_v23 = vsub.s32 0, %v774_v22  ;;  %v779_v25 = vsub.s32 1, %v774_v22  ;;  %v1036_v51 = vld [vmem:[%s525_s28] sm:$0xff] }
 0x119   : > { %1424 = vmatpush3.bf16.msra.mxu0 %v1490_v3  ;;  %1501 = vrcp.f32 %v746_v4 }
 0x11a   : > { %1425 = vmatprep.subr.bf16.mxu0 %v1491_v15  ;;  %v776_v26 = vrot.slane %v771_v24, %v775_v23  ;;  %v780_v28 = vrot.slane %v771_v24, %v779_v25 }
 0x11b   : > { %866 = vmatpush1.bf16.msra.mxu1 %v1468_v52  ;;  %v1037_v52 = vld [vmem:[%s525_s28 + $0x8] sm:$0xff] }
 0x11c   : > { %867 = vmatprep.subr.bf16.mxu1 %v1473_v53  ;;  %v749_v5 = vpop.xlane.xlu1 %748 }
 0x11d   : > { %1503 = vrcp.f32 %v749_v5  ;;  %1426 = vmatpush3.bf16.msra.mxu0 %v1491_v15 }
 0x11e   : > { %1427 = vmatprep.subr.bf16.mxu0 %v1492_v16 }
 0x11f   : > { %868 = vmatpush1.bf16.msra.mxu1 %v1471_v54 }
 0x120   : > { %869 = vmatprep.subr.bf16.mxu1 %v1476_v55 }
 0x121   : > { %1428 = vmatpush3.bf16.msra.mxu0 %v1492_v16 }
 0x122   : > { %1429 = vmatprep.subr.bf16.mxu0 %v1493_v17 }
 0x123   : > { %870 = vmatpush1.bf16.msra.mxu1 %v1474_v56 }
 0x124   : > { %871 = vmatprep.subr.bf16.mxu1 %v1479_v57 }
 0x125   : > { %1430 = vmatpush3.bf16.msra.mxu0 %v1493_v17 }
 0x126   : > { %v1502_v8 = vpop.eup %1501  ;;  %1431 = vmatprep.subr.bf16.mxu0 %v1494_v18 }
 0x127   : > { %872 = vmatpush1.bf16.msra.mxu1 %v1477_v58 }
 0x128   : > { %873 = vmatprep.subr.bf16.mxu1 %v1482_v59 }
 0x129   : > { %1432 = vmatpush3.bf16.msra.mxu0 %v1494_v18 }
 0x12a   : > { %v1504_v9 = vpop.eup %1503  ;;  %1433 = vmatprep.subr.bf16.mxu0 %v1495_v19 }
 0x12b   : > { %874 = vmatpush1.bf16.msra.mxu1 %v1480_v60  ;;  %v1039_v60 = vand.u32 127, %v773_v21 }
 0x12c   : > { %875 = vmatprep.subr.bf16.mxu1 %v1485_v61 }
 0x12d   : > { %1434 = vmatpush3.bf16.msra.mxu0 %v1495_v19 }
 0x12e   : > { %1435 = vmatprep.subr.bf16.mxu0 %v1496_v20 }
 0x12f   : > { %876 = vmatpush1.bf16.msra.mxu1 %v1483_v62 }
 0x130   : > { %877 = vmatprep.subr.bf16.mxu1 %v1488_v63 }
 0x131   : > { %1436 = vmatpush3.bf16.msra.mxu0 %v1496_v20 }
 0x133   : > { %878 = vmatpush1.bf16.msra.mxu1 %v1486_v0 }
 0x1d6   : > { %v737_v6 = vpop.f32.mrf.mxu1 }
 0x1d7   : > { %v751_v11 = vmul.f32 %v1502_v8, %v737_v6 }
 0x1d8   : > { %v1419_v7 = vpop.f32.mrf.mxu1 }
 0x1da   : > { %v740_v10 = vpop.f32.mrf.mxu1 }
 0x1db   : > { %v753_v12 = vmul.f32 %v1504_v9, %v740_v10 }
 0x1dc   : > { %v1420_v13 = vpop.f32.mrf.mxu1 }
 0x1dd   : > { %v754_v14 = vpack.c.bf16 %v753_v12, %v751_v11  ;;  %v1790_v12 = vld [vmem:[%s530_s14 + $0x8] sm:$0xff] }
 0x1de   : > { %v1125_v15 = vsel %vm1114_vm6, %v1790_v12, 0.0 }
 0x1df   : > { %896 = vmatmul.mubr.bf16.vlgmr.msra.gmra.mxu1 %v754_v14 }
 0x29f   : > { %v897_v27 = vpop.f32.mrf.mxu1 }
 0x2a0   : > { %v898_v29 = vadd.f32 %v897_v27, %v776_v26 }
 0x2a1   : > { %v899_v30 = vpop.f32.mrf.mxu1 }
 0x2a2   : > { %v900_v31 = vadd.f32 %v899_v30, %v780_v28  ;;  %1505 = vtanh.f32 %v898_v29  ;;  %v1111_v29 = vld [vmem:[%s535_s19 + $0x8] sm:$0xff] }
 0x2a3   : > { %v901_v32 = vpop.f32.mrf.mxu1 }
 0x2a4   : > { %v902_v33 = vadd.f32 %v901_v32, %v776_v26  ;;  %v1145_v32 = vsel %vm1114_vm6, %v1111_v29, 0.0 }
 0x2a5   : > { %v903_v34 = vpop.f32.mrf.mxu1 }
 0x2a6   : > { %1507 = vtanh.f32 %v902_v33  ;;  %v904_v35 = vadd.f32 %v903_v34, %v780_v28  ;;  %v1110_v28 = vld [vmem:[%s535_s19] sm:$0xff] }
 0x2a7   : > { %1509 = vtanh.f32 %v900_v31  ;;  %v1144_v31 = vsel %vm1114_vm6, %v1110_v28, 0.0 }
 0x2a8   : > { %1511 = vtanh.f32 %v904_v35 }
 0x2af   : > { %v1506_v36 = vpop.eup %1505 }
 0x2b3   : > { %v1508_v37 = vpop.eup %1507 }
 0x2b4   : > { %v1510_v38 = vpop.eup %1509  ;;  %v910_v39 = vpack.c.bf16 %v1508_v37, %v1506_v36  ;;  %v1146_v36 = vadd.f32 %v1145_v32, %v1144_v31 }
 0x2b5   : > { %v1512_v40 = vpop.eup %1511 }
 0x2b6   : > { %1437 = vmatprep.mubr.bf16.mxu0 %v910_v39  ;;  %v911_v41 = vpack.c.bf16 %v1512_v40, %v1510_v38  ;;  %v1147_v40 = vrot.slane %v1146_v36, 4 }
 0x2b8   : > { %1438 = vmatmul.mubr.bf16.vlgmr.msra.gmra.mxu0 %v911_v41 }
 0x378   : > { %v1439_v43 = vpop.f32.mrf.mxu0 }
 0x379   : > { %v1026_v44 = vadd.f32 %v1439_v43, %v1355_v42 }
 0x37a   : > { %v1017_v45 = vpop.f32.mrf.mxu0 }
 0x37b   : > { %1034 = vst [vmem:[%s540_s23 + $0x10] sm:$0xff] %v1026_v44  ;;  %v1018_v46 = vadd.f32 %v1355_v42, %v1017_v45  ;;  %1056 = vmax.xlane.f32.xlu0 %v1026_v44  ;;  %v1148_v45 = vadd.f32 %v1147_v40, %v1146_v36 }
 0x37c   : > { %v1440_v47 = vpop.f32.mrf.mxu0 }
 0x37d   : > { %1032 = vst [vmem:[%s540_s23] sm:$0xff] %v1018_v46  ;;  %v1029_v48 = vadd.f32 %v1440_v47, %v1355_v42 }
 0x37e   : > { %v1020_v49 = vpop.f32.mrf.mxu0 }
 0x37f   : > { %1035 = vst [vmem:[%s540_s23 + $0x18] sm:$0xff] %v1029_v48  ;;  %v1021_v50 = vadd.f32 %v1355_v42, %v1020_v49  ;;  %1058 = vmax.xlane.f32.xlu1 %v1029_v48 }
 0x381   : > { %1033 = vst [vmem:[%s540_s23 + $0x8] sm:$0xff] %v1021_v50  ;;  %1054 = vmax.xlane.f32.xlu0 %v1021_v50  ;;  %s543_s23 = scalar_lea.vmem %s1833_s13, %s1835_s26 }
 0x390   : > { %1041 = vperm.xlu1 %1456, %v1036_v51  }
 0x394   : > { %1044 = vperm.xlu1 %1456, %v1037_v52  }
 0x3b8   : > { %1052 = vmax.xlane.f32.xlu1 %v1018_v46 }
 0x404   : > { %v1770_v53 = vpop.xlane.xlu0 %1056 }
 0x405   : > { %v1062_v54 = vsub.f32 %v1026_v44, %v1770_v53 }
 0x407   : > { %v1068_v55 = vmul.f32 1.442695, %v1062_v54 }
 0x408   : > { %v1773_v56 = vpop.xlane.xlu1 %1058 }
 0x409   : > { %1513 = vpow2.f32 %v1068_v55  ;;  %v1063_v57 = vsub.f32 %v1029_v48, %v1773_v56 }
 0x40a   : > { %v1778_v6 = vpop.xlane.xlu0 %1054 }
 0x40b   : > { %v1070_v58 = vmul.f32 1.442695, %v1063_v57  ;;  %v1061_v8 = vsub.f32 %v1021_v50, %v1778_v6 }
 0x40c   : > { %v1042_v59 = vpop.permute.xlu1 %1041 }
 0x40d   : > { %1515 = vpow2.f32 %v1070_v58  ;;  %vm1046_vm5 = vcmp.eq.s32.totalorder %v1039_v60, %v1042_v59  ;;  %v1066_v11 = vmul.f32 1.442695, %v1061_v8 }
 0x40e   : > { %v1364_v3 = vsel %vm1046_vm5, 1.0, %v1537_v1 }
 0x40f   : > { %v1094_v4 = vmul.f32 %v1364_v3, %v1026_v44  ;;  %v1092_v18 = vmul.f32 %v1364_v3, %v1018_v46 }
 0x410   : > { %v1045_v61 = vpop.permute.xlu1 %1044 }
 0x411   : > { %vm1047_vm4 = vcmp.eq.s32.totalorder %v1039_v60, %v1045_v61 }
 0x412   : > { %v1365_v62 = vsel %vm1047_vm4, 1.0, %v1537_v1  ;;  %v1788_v1 = vld [vmem:[%s530_s14] sm:$0xff] }
 0x413   : > { %v1093_v63 = vmul.f32 %v1365_v62, %v1021_v50  ;;  %v1095_v5 = vmul.f32 %v1365_v62, %v1029_v48  ;;  %v1124_v14 = vsel %vm1114_vm6, %v1788_v1, 0.0  ;;  %v1149_v50 = vrot.slane %v1148_v45, 2 }
 0x414   : > { %v1126_v16 = vadd.f32 %v1125_v15, %v1124_v14 }
 0x415   : > { %1098 = vadd.xlane.f32.xlu1 %v1093_v63 }
 0x416   : > { %v1514_v0 = vpop.eup %1513  ;;  %v1127_v19 = vrot.slane %v1126_v16, 4 }
 0x417   : > { %1076 = vadd.xlane.f32.xlu0 %v1514_v0 }
 0x418   : > { %v1128_v20 = vadd.f32 %v1127_v19, %v1126_v16 }
 0x41a   : > { %v1516_v2 = vpop.eup %1515  ;;  %v1129_v21 = vrot.slane %v1128_v20, 2 }
 0x41b   : > { %1078 = vadd.xlane.f32.xlu0 %v1516_v2 }
 0x41c   : > { %v1130_v22 = vadd.f32 %v1129_v21, %v1128_v20 }
 0x41e   : > { %v1131_v23 = vrot.slane %v1130_v22, 1 }
 0x41f   : > { %1100 = vadd.xlane.f32.xlu0 %v1094_v4 }
 0x420   : > { %v1132_v24 = vadd.f32 %v1131_v23, %v1130_v22 }
 0x423   : > { %1102 = vadd.xlane.f32.xlu0 %v1095_v5 }
 0x441   : > { %v1780_v7 = vpop.xlane.xlu1 %1052 }
 0x442   : > { %v1060_v9 = vsub.f32 %v1018_v46, %v1780_v7 }
 0x444   : > { %v1064_v10 = vmul.f32 1.442695, %v1060_v9 }
 0x446   : > { %1517 = vpow2.f32 %v1064_v10 }
 0x447   : > { %1519 = vpow2.f32 %v1066_v11 }
 0x453   : > { %v1518_v13 = vpop.eup %1517 }
 0x454   : > { %1072 = vadd.xlane.f32.xlu0 %v1518_v13  ;;  %v1520_v17 = vpop.eup %1519 }
 0x458   : > { %1074 = vadd.xlane.f32.xlu0 %v1520_v17 }
 0x45c   : > { %1096 = vadd.xlane.f32.xlu0 %v1092_v18 }
 0x472   : > { %1154 = vrot.lane.b32.xlu0 %v1132_v24, %s1540_s15 }
 0x49e   : > { %v1099_v4 = vpop.xlane.xlu1 %1098 }
 0x4a0   : > { %v1077_v25 = vpop.xlane.xlu0 %1076 }
 0x4a1   : > { %1521 = vlog2.f32 %v1077_v25 }
 0x4a4   : > { %v1079_v26 = vpop.xlane.xlu0 %1078 }
 0x4a5   : > { %1523 = vlog2.f32 %v1079_v26 }
 0x4a8   : > { %v1101_v33 = vpop.xlane.xlu0 %1100 }
 0x4ac   : > { %v1103_v41 = vpop.xlane.xlu0 %1102 }
 0x4ae   : > { %v1522_v27 = vpop.eup %1521 }
 0x4af   : > { %v1085_v30 = vmul.f32 0.6931472, %v1522_v27 }
 0x4b1   : > { %v1090_v34 = vadd.f32 %v1085_v30, %v1770_v53  ;;  %v1150_v53 = vadd.f32 %v1149_v50, %v1148_v45 }
 0x4b2   : > { %v1524_v35 = vpop.eup %1523 }
 0x4b3   : > { %v1087_v37 = vmul.f32 0.6931472, %v1524_v35  ;;  %v1106_v38 = vsub.f32 %v1090_v34, %v1101_v33  ;;  %v1151_v57 = vrot.slane %v1150_v53, 1 }
 0x4b5   : > { %v1091_v39 = vadd.f32 %v1087_v37, %v1773_v56  ;;  %v1133_v42 = vmul.f32 %v1110_v28, %v1106_v38  ;;  %v1152_v58 = vadd.f32 %v1151_v57, %v1150_v53 }
 0x4b7   : > { %v1107_v43 = vsub.f32 %v1091_v39, %v1103_v41  ;;  %v1135_v46 = vsel %vm1114_vm6, %v1133_v42, 0.0 }
 0x4b9   : > { %v1134_v44 = vmul.f32 %v1111_v29, %v1107_v43 }
 0x4bb   : > { %v1136_v47 = vsel %vm1114_vm6, %v1134_v44, 0.0 }
 0x4bc   : > { %v1137_v48 = vadd.f32 %v1136_v47, %v1135_v46 }
 0x4be   : > { %v1138_v49 = vrot.slane %v1137_v48, 4 }
 0x4c0   : > { %v1139_v51 = vadd.f32 %v1138_v49, %v1137_v48 }
 0x4c2   : > { %v1140_v52 = vrot.slane %v1139_v51, 2 }
 0x4c4   : > { %v1141_v54 = vadd.f32 %v1140_v52, %v1139_v51 }
 0x4c6   : > { %v1142_v55 = vrot.slane %v1141_v54, 1 }
 0x4c8   : > { %v1143_v56 = vadd.f32 %v1142_v55, %v1141_v54 }
 0x4ca   : > { %1158 = vrot.lane.b32.xlu1 %v1143_v56, %s1541_s16 }
 0x4ce   : > { %1162 = vrot.lane.b32.xlu1 %v1152_v58, %s1542_s20 }
 0x4dd   : > { %v1073_v59 = vpop.xlane.xlu0 %1072 }
 0x4e1   : > { %v1075_v60 = vpop.xlane.xlu0 %1074 }
 0x4e2   : > { %1525 = vlog2.f32 %v1075_v60 }
 0x4e3   : > { %1527 = vlog2.f32 %v1073_v59 }
 0x4e5   : > { %v1097_v8 = vpop.xlane.xlu0 %1096 }
 0x4e9   : > { %v1155_v20 = vpop.permute.xlu0 %1154 }
 0x4ef   : > { %v1526_v61 = vpop.eup %1525 }
 0x4f0   : > { %v1528_v62 = vpop.eup %1527  ;;  %v1083_v63 = vmul.f32 0.6931472, %v1526_v61 }
 0x4f1   : > { %v1081_v0 = vmul.f32 0.6931472, %v1528_v62 }
 0x4f2   : > { %v1089_v2 = vadd.f32 %v1083_v63, %v1778_v6 }
 0x4f3   : > { %v1088_v3 = vadd.f32 %v1081_v0, %v1780_v7 }
 0x4f4   : > { %v1105_v5 = vsub.f32 %v1089_v2, %v1099_v4 }
 0x4f5   : > { %v1104_v9 = vsub.f32 %v1088_v3, %v1097_v8 }
 0x4f6   : > { %v1113_v10 = vmul.f32 %v1790_v12, %v1105_v5 }
 0x4f7   : > { %v1112_v11 = vmul.f32 %v1788_v1, %v1104_v9 }
 0x4f8   : > { %v1116_v13 = vsel %vm1114_vm6, %v1113_v10, 0.0 }
 0x4f9   : > { %v1115_v14 = vsel %vm1114_vm6, %v1112_v11, 0.0 }
 0x4fa   : > { %v1117_v15 = vadd.f32 %v1116_v13, %v1115_v14 }
 0x4fc   : > { %v1118_v16 = vrot.slane %v1117_v15, 4 }
 0x4fe   : > { %v1119_v17 = vadd.f32 %v1118_v16, %v1117_v15 }
 0x500   : > { %v1120_v18 = vrot.slane %v1119_v17, 2 }
 0x502   : > { %v1121_v6 = vadd.f32 %v1120_v18, %v1119_v17 }
 0x504   : > { %v1122_v19 = vrot.slane %v1121_v6, 1 }
 0x506   : > { %v1123_v7 = vadd.f32 %v1122_v19, %v1121_v6 }
 0x508   : > { %v1165_v12 = vsel %vm1114_vm6, %v1123_v7, %v1155_v20 }
 0x53c   : > { %v1159_v21 = vpop.permute.xlu1 %1158 }
 0x53d   : > { %v1167_v1 = vsel %vm1166_vm7, %v1165_v12, %v1159_v21 }
 0x540   : > { %v1163_v22 = vpop.permute.xlu1 %1162 }
 0x541   : > { %v1169_v23 = vsel %vm1168_vm8, %v1167_v1, %v1163_v22 }
 0x542   : > { %1171 = vst.msk [vmem:[%s543_s23] sm:$0x1] %vm1170_vm9, %v1169_v23 }
 0x543 PF: > { %s24_s25 = sadd.s32 1, %s1535_s25  }
 0x544   : > { %p21_p4 = scmp.ge.s32.totalorder %s24_s25, 4  }
 0x546   :  { %23 = sbr.rel (!%p21_p4) target bundleno = 1 (0x1), region = 125 }

</bundles_post_ra>
